<compile_context>
chip_gen: v7x
topology: tpu7x:2x2x1
jax: 0.10.0
libtpu: 0.0.40
codegen_flags: <defaults>
</compile_context>

<pallas_src>
import jax
import jax.numpy as jnp
from jax import lax
from jax.experimental import pallas as pl
from jax.experimental.pallas import tpu as pltpu

EPSILON = 1e-6


# ----------------------------- Pallas kernels ------------------------------ #

def _mmt_kernel(m_ref, out_ref):
    # M @ M^T : contract the code axis (last dim of both operands).
    m = m_ref[...]
    out_ref[...] = lax.dot_general(
        m, m, (((1,), (1,)), ((), ())), preferred_element_type=jnp.float32)


def _solve_w_kernel(z_ref, m_ref, minv_ref, w_ref):
    # Fused solve: zm = z @ M^T, then w = zm @ (M M^T + reg)^-1 (zm stays in VMEM).
    zm = lax.dot_general(
        z_ref[...], m_ref[...], (((1,), (1,)), ((), ())),
        preferred_element_type=jnp.float32)
    w_ref[...] = jnp.dot(zm, minv_ref[...], preferred_element_type=jnp.float32)


def _solve_read_kernel(z_ref, m_ref, minv_ref, noise_ref, w_ref, r_ref):
    # Fully fused read path: solve w, add (pre-scaled) read noise, retrieve.
    # All intermediates are VMEM-resident; both outputs are 128-lane dense.
    m = m_ref[...]
    zm = lax.dot_general(
        z_ref[...], m, (((1,), (1,)), ((), ())),
        preferred_element_type=jnp.float32)
    w = jnp.dot(zm, minv_ref[...], preferred_element_type=jnp.float32)
    w = w + noise_ref[...]                     # f32 elementwise on the VPU
    w_ref[...] = w                             # [rows, K]
    r_ref[...] = jnp.dot(w, m, preferred_element_type=jnp.float32)  # [rows, C]


def _write_mean_kl_kernel(wpinv_ref, z_ref, prior_ref, mean_ref, kl_ref):
    # Fused write-mean + KL: per-batch new_mean = pinv(w_b) @ z_b (batched dot,
    # single grid step) and KL sum-of-squares on the VMEM-resident result.
    wp = wpinv_ref[...]                        # [B, K, E]
    zb = z_ref[...]                            # [B, E, C]
    nm = jnp.einsum("bke,bec->bkc", wp, zb,
                    preferred_element_type=jnp.float32)   # [B, K, C]
    mean_ref[...] = nm
    d = nm - prior_ref[...][None]              # prior_mean broadcast over batch
    kl_ref[0, 0] = 0.5 * jnp.sum(d * d) / nm.shape[0]


# ----------------------------- kernel wrappers ------------------------------ #

def _row_block(rows):
    # Split the row axis 2-way when cleanly possible: lets v7x's two TensorCores
    # share the (parallel) grid axis; on v5e/v6e the extra step costs ~0.35 us.
    if rows % 16 == 0:
        return rows // 2
    return rows


def compute_mmt(M):
    K, C = M.shape
    return pl.pallas_call(
        _mmt_kernel,
        out_shape=jax.ShapeDtypeStruct((K, K), jnp.float32),
        grid=(1,),
        in_specs=[pl.BlockSpec((K, C), lambda i: (0, 0))],
        out_specs=pl.BlockSpec((K, K), lambda i: (0, 0)),
    )(M)


def solve_attention_weights(z2, M, MMT_inv):
    # z2: [rows, C], M: [K, C], MMT_inv: [K, K]  ->  w: [rows, K]
    rows, C = z2.shape
    K = M.shape[0]
    rb = _row_block(rows)
    return pl.pallas_call(
        _solve_w_kernel,
        out_shape=jax.ShapeDtypeStruct((rows, K), jnp.float32),
        grid=(rows // rb,),
        in_specs=[pl.BlockSpec((rb, C), lambda i: (i, 0)),
                  pl.BlockSpec((K, C), lambda i: (0, 0)),
                  pl.BlockSpec((K, K), lambda i: (0, 0))],
        out_specs=pl.BlockSpec((rb, K), lambda i: (i, 0)),
        compiler_params=pltpu.CompilerParams(
            dimension_semantics=("parallel",)),
    )(z2, M, MMT_inv)


def solve_and_read(z2, M, MMT_inv, noise2):
    # Fused read: z2: [rows, C], M: [K, C], MMT_inv: [K, K], noise2: [rows, K]
    #   -> (w: [rows, K], retrieved: [rows, C])
    rows, C = z2.shape
    K = M.shape[0]
    rb = _row_block(rows)
    return pl.pallas_call(
        _solve_read_kernel,
        out_shape=(jax.ShapeDtypeStruct((rows, K), jnp.float32),
                   jax.ShapeDtypeStruct((rows, C), jnp.float32)),
        grid=(rows // rb,),
        in_specs=[pl.BlockSpec((rb, C), lambda i: (i, 0)),
                  pl.BlockSpec((K, C), lambda i: (0, 0)),
                  pl.BlockSpec((K, K), lambda i: (0, 0)),
                  pl.BlockSpec((rb, K), lambda i: (i, 0))],
        out_specs=(pl.BlockSpec((rb, K), lambda i: (i, 0)),
                   pl.BlockSpec((rb, C), lambda i: (i, 0))),
        compiler_params=pltpu.CompilerParams(
            dimension_semantics=("parallel",)),
    )(z2, M, MMT_inv, noise2)


def write_mean_and_kl(w_pinv, z_b, prior_mean):
    # w_pinv: [B, K, E], z_b: [B, E, C], prior_mean: [K, C]
    #   -> (new_mean: [B, K, C], kl: scalar)
    B, K, E = w_pinv.shape
    C = z_b.shape[-1]
    new_mean, kl = pl.pallas_call(
        _write_mean_kl_kernel,
        out_shape=(jax.ShapeDtypeStruct((B, K, C), jnp.float32),
                   jax.ShapeDtypeStruct((1, 1), jnp.float32)),
        grid=(1,),
        in_specs=[pl.BlockSpec((B, K, E), lambda i: (0, 0, 0)),
                  pl.BlockSpec((B, E, C), lambda i: (0, 0, 0)),
                  pl.BlockSpec((K, C), lambda i: (0, 0))],
        out_specs=(pl.BlockSpec((B, K, C), lambda i: (0, 0, 0)),
                   pl.BlockSpec((1, 1), lambda i: (0, 0),
                                memory_space=pltpu.MemorySpace.SMEM)),
        compiler_params=pltpu.CompilerParams(
            dimension_semantics=("arbitrary",)),
    )(w_pinv, z_b, prior_mean)
    return new_mean, kl[0, 0]


# ------------------------------- module port -------------------------------- #

class TinyLarimarMemoryPallas:
    """JAX/Pallas port of TinyLarimarMemory (direct_writing=True, w_logvar_setting=0)."""

    def __init__(self, code_size=128, memory_size=128, direct_writing=True,
                 observation_noise_std=0.1, identity_init=False,
                 w_logvar_setting=0, deterministic=False, *, key):
        self.code_size = code_size
        self.memory_size = memory_size
        self.observation_noise_std = observation_noise_std
        self.direct_writing = direct_writing
        self.deterministic = deterministic
        self.w_logvar_setting = w_logvar_setting
        if identity_init:
            eye = jnp.eye(min(memory_size, code_size), code_size, dtype=jnp.float32)
            pad = jnp.zeros((max(memory_size - code_size, 0), code_size), jnp.float32)
            self.memory_mean = jnp.concatenate([eye, pad], axis=0)[:memory_size]
        else:
            self.memory_mean = 0.1 * jax.random.normal(
                key, (memory_size, code_size), jnp.float32)
        self.memory_logvar = jnp.zeros((1,), jnp.float32)
        self.w_logvar = jnp.zeros((1,), jnp.float32)   # w_logvar_setting == 0
        # MMT / MMT_inv depend only on memory_mean -> cache per parameter update.
        self._refresh_memory_cache()

    def _refresh_memory_cache(self):
        K = self.memory_size
        MMT = compute_mmt(self.memory_mean)                        # Pallas
        MMT_reg = MMT + EPSILON * jnp.eye(K, dtype=jnp.float32)
        # TODO(synk): torch.inverse has no Pallas primitive; done in plain JAX.
        self.MMT_inv = jnp.linalg.inv(MMT_reg)

    def write_to_memory(self, input_encoded, key):
        E, B, C = input_encoded.shape
        K = self.memory_size
        noise = jax.random.normal(key, input_encoded.shape,
                                  jnp.float32) * self.observation_noise_std
        z_noisy = input_encoded + noise
        z2 = z_noisy.reshape(E * B, C)
        w = solve_attention_weights(z2, self.memory_mean,
                                    self.MMT_inv).reshape(E, B, K)   # Pallas (fused)
        w_b = jnp.transpose(w, (1, 0, 2))                            # [B, E, K]
        z_b = jnp.transpose(z_noisy, (1, 0, 2))                      # [B, E, C]
        # TODO(synk): torch.pinverse has no Pallas primitive; done in plain JAX.
        w_pinv = jax.vmap(jnp.linalg.pinv)(w_b)                      # [B, K, E]
        new_mean, kl = write_mean_and_kl(w_pinv, z_b, self.memory_mean)  # Pallas (fused)
        return new_mean, kl

    def read_from_memory(self, query_encoded, key):
        E, B, C = query_encoded.shape
        K = self.memory_size
        q2 = query_encoded.reshape(E * B, C)
        if self.deterministic:
            noise2 = jnp.zeros((E * B, K), jnp.float32)
        else:
            w_std = jnp.exp(0.5 * self.w_logvar[0])
            noise2 = (jax.random.normal(key, (E, B, K), jnp.float32)
                      * w_std).reshape(E * B, K)
        w2, r2 = solve_and_read(q2, self.memory_mean, self.MMT_inv, noise2)  # Pallas
        return r2.reshape(E, B, C), w2.reshape(E, B, K)

    def forward(self, input_encoded, mode="write", *, key):
        if mode == "write":
            new_mean, kl = self.write_to_memory(input_encoded, key)
            return new_mean, kl
        elif mode == "read":
            return self.read_from_memory(input_encoded, key)
        raise ValueError(f"Unknown mode: {mode}")


# ------------------------------ reference check ----------------------------- #

def _reference_write(mem, x, key):
    noise = jax.random.normal(key, x.shape, jnp.float32) * mem.observation_noise_std
    z = x + noise
    M = mem.memory_mean
    K = M.shape[0]
    MMT_inv = jnp.linalg.inv(M @ M.T + EPSILON * jnp.eye(K, dtype=jnp.float32))
    w = jnp.einsum("ebc,kc->ebk", z, M) @ MMT_inv
    w_b = jnp.transpose(w, (1, 0, 2))
    z_b = jnp.transpose(z, (1, 0, 2))
    w_pinv = jax.vmap(jnp.linalg.pinv)(w_b)
    new_mean = jnp.einsum("bke,bec->bkc", w_pinv, z_b)
    kl = 0.5 * jnp.sum((new_mean - M[None]) ** 2) / new_mean.shape[0]
    return new_mean, kl


def _reference_read(mem, x, key):
    M = mem.memory_mean
    K = M.shape[0]
    MMT_inv = jnp.linalg.inv(M @ M.T + EPSILON * jnp.eye(K, dtype=jnp.float32))
    w = jnp.einsum("ebc,kc->ebk", x, M) @ MMT_inv
    w = w + jax.random.normal(key, w.shape, jnp.float32) * jnp.exp(0.5 * mem.w_logvar[0])
    retrieved = jnp.einsum("ebk,kc->ebc", w, M)
    return retrieved, w


# ----------------------------------- main ------------------------------------ #

if __name__ == "__main__":
    key = jax.random.PRNGKey(0)
    k_param, k_input, k_wnoise, k_rnoise = jax.random.split(key, 4)

    # small shapes: episode=8, batch=2, code_size=128, memory_size=128
    E, B, C, K = 8, 2, 128, 128
    mem = TinyLarimarMemoryPallas(code_size=C, memory_size=K, key=k_param)
    x = jax.random.normal(k_input, (E, B, C), jnp.float32)

    # write mode (module default)
    new_memory_mean, kl_loss = mem.forward(x, mode="write", key=k_wnoise)
    # read mode
    retrieved, attention = mem.forward(x, mode="read", key=k_rnoise)

    jax.block_until_ready((new_memory_mean, kl_loss, retrieved, attention))

    # correctness checks against pure-JAX references
    ref_mean, ref_kl = _reference_write(mem, x, k_wnoise)
    ref_ret, ref_w = _reference_read(mem, x, k_rnoise)

    assert new_memory_mean.shape == (B, K, C)
    assert retrieved.shape == (E, B, C)
    assert attention.shape == (E, B, K)
    assert jnp.allclose(new_memory_mean, ref_mean, atol=1e-3, rtol=1e-3)
    assert jnp.allclose(kl_loss, ref_kl, atol=1e-2, rtol=1e-3)
    assert jnp.allclose(attention, ref_w, atol=2e-3, rtol=2e-3)
    assert jnp.allclose(retrieved, ref_ret, atol=2e-3, rtol=2e-3)

    print("KERNEL_OK")
</pallas_src>

<mosaic_0001>
module attributes {stable_mosaic.version = 11 : i64} {
  func.func @_mmt_kernel(%arg0: i32, %arg1: memref<128x128xf32, #tpu.memory_space<vmem>>, %arg2: memref<128x128xf32, #tpu.memory_space<vmem>>) attributes {dimension_semantics = [#tpu.dimension_semantics<arbitrary>], iteration_bounds = array<i64: 1>, scalar_prefetch = 0 : i64, scratch_operands = 0 : i64, tpu.core_type = #tpu.core_type<tc>, window_params = [{pipeline_mode = #tpu.pipeline_mode<synchronous>, transform_indices = @transform_0, window_bounds = array<i64: 128, 128>}, {pipeline_mode = #tpu.pipeline_mode<synchronous>, transform_indices = @transform_1, window_bounds = array<i64: 128, 128>}]} {
    %c0 = arith.constant 0 : index
    %c0_0 = arith.constant 0 : index
    %0 = vector.load %arg1[%c0, %c0_0] : memref<128x128xf32, #tpu.memory_space<vmem>>, vector<128x128xf32>
    %cst = arith.constant dense<0.000000e+00> : vector<128x128xf32>
    %1 = tpu.matmul %0, %0, %cst {dimension_numbers = #tpu.dot_dimension_numbers<[1], [1], [0], [0], [0, 0, 1, 0], [], []>} : vector<128x128xf32>, vector<128x128xf32>, vector<128x128xf32> -> vector<128x128xf32>
    %c0_1 = arith.constant 0 : index
    %c0_2 = arith.constant 0 : index
    %2 = vector.load %arg2[%c0_1, %c0_2] : memref<128x128xf32, #tpu.memory_space<vmem>>, vector<128x128xf32>
    tpu.vector_store %arg2[%c0_1, %c0_2], %1 {strides = array<i32>} : memref<128x128xf32, #tpu.memory_space<vmem>>, vector<128x128xf32>,
    return
  }
  func.func @transform_0(%arg0: i32) -> (i32, i32) {
    %c0_i32 = arith.constant 0 : i32
    %c0_i32_0 = arith.constant 0 : i32
    %c0_i32_1 = arith.constant 0 : i32
    return %c0_i32, %c0_i32_0 : i32, i32
  }
  func.func @transform_1(%arg0: i32) -> (i32, i32) {
    %c0_i32 = arith.constant 0 : i32
    %c0_i32_0 = arith.constant 0 : i32
    %c0_i32_1 = arith.constant 0 : i32
    return %c0_i32, %c0_i32_0 : i32, i32
  }
}

</mosaic_0001>

<bundles_post_ra>
// kernel: tpu_custom_call.1
= control target key start
LH: loop header
LB: loop body
LE: loop exit
PB: predicated region body
PF: predicated region fallthrough
CT: control target
= control target key end

     0   :  { %6 = vsyncpa [#allocation3], 0  ;;  %s449_s0 = inlined_call_operand.hbm [shape: f32[128,128], index: 0, kind: input, shape index: {}]   ;;  %s450_s1 = inlined_call_operand.hbm [shape: f32[128,128], index: 1, kind: output, shape index: {}]  }
   0x1   :  { %7 = vsyncpa [#allocation4], 0  ;;  %s405_s6 = smov [#allocation2]   ;;  %s357_s10 = scalar_lea.hbm %s449_s0, 2048 }
   0x2   :  { %s13_s7 = sshll.u32 %s405_s6, 4  ;;  %p358_p0 = scmp.ne.s32.totalorder %s449_s0, %s357_s10  ;;  %s14_s7 = int_to_ptr.vmem [resolvable:$true] %s13_s7 }
   0x3   :  { %p361_p1 = scmp.lt.u32.totalorder %s357_s10, %s449_s0 }
   0x5   :  { %p363_p2 = pnand %p361_p1, %p358_p0 }
   0x7   :  { %366 = shalt.err (!%p363_p2)
}
   0x8   :  { %s367_s15 = scalar_lea.vmem %s14_s7, 2048  ;;  %p372_p4 = scmp.lt.s32.totalorder %s14_s7, %s14_s7 }
   0x9   :  { %p368_p3 = scmp.ne.s32.totalorder %s14_s7, %s367_s15  ;;  %p373_p5 = scmp.lt.s32.totalorder %s367_s15, %s367_s15 }
   0xb   :  { %p374_p6 = por %p373_p5, %p372_p4 }
   0xd   :  { %p375_p7 = pnand %p374_p6, %p368_p3 }
   0xf   :  { %378 = shalt.err (!%p375_p7)
}
  0x10   :  { %s406_s16 = smov 128   ;;  %s407_s17 = smov 8  }
  0x11   :  { %19 = dma.hbm_to_vmem [thread:$0]  %s449_s0, 2048, %s14_s7, [#allocation3], %s406_s16, %s406_s16, %s407_s17  }
  0x12   :  { %401 = dma.done.wait [#allocation3], 2048  }
  0x13   :  { %402 = vsyncadd [#allocation3], 4294965248  ;;  %v23_v0 = vld [vmem:[#allocation2] sm:$0xff]  ;;  %v24_v1 = vld [vmem:[#allocation2 + $0x8] sm:$0xff]  ;;  %s408_s0 = smov [#allocation5]  }
  0x14   :  { %v25_v2 = vld [vmem:[#allocation2 + $0x10] sm:$0xff]  ;;  %v305_v3 = vpack.c.bf16 %v24_v1, %v23_v0  ;;  %v26_v4 = vld [vmem:[#allocation2 + $0x18] sm:$0xff]  ;;  %281 = vmatprep.mubr.f32.mxu0 %v23_v0  ;;  %v31_v6 = vld [vmem:[#allocation2 + $0x40] sm:$0xff]  ;;  %s205_s20 = sshll.u32 %s408_s0, 4  ;;  %s206_s20 = int_to_ptr.vmem [resolvable:$true] %s205_s20 }
  0x15   :  { %v309_v5 = vpack.c.bf16 %v26_v4, %v25_v2  ;;  %v27_v7 = vld [vmem:[#allocation2 + $0x20] sm:$0xff]  ;;  %v28_v8 = vld [vmem:[#allocation2 + $0x28] sm:$0xff]  ;;  %293 = vmatprep.mubr.f32.mxu1 %v31_v6  ;;  %v29_v10 = vld [vmem:[#allocation2 + $0x30] sm:$0xff]  ;;  %s379_s21 = scalar_lea.vmem %s206_s20, 2048  ;;  %p384_p9 = scmp.lt.s32.totalorder %s206_s20, %s206_s20 }
  0x16   :  { %306 = vmatprep.subr.bf16.mxu0 %v305_v3  ;;  %337 = vmatprep.subr.bf16.mxu1 %v305_v3  ;;  %v313_v9 = vpack.c.bf16 %v28_v8, %v27_v7  ;;  %v30_v11 = vld [vmem:[#allocation2 + $0x38] sm:$0xff]  ;;  %v32_v13 = vld [vmem:[#allocation2 + $0x48] sm:$0xff]  ;;  %v33_v15 = vld [vmem:[#allocation2 + $0x50] sm:$0xff]  ;;  %p380_p8 = scmp.ne.s32.totalorder %s206_s20, %s379_s21  ;;  %p385_p10 = scmp.lt.s32.totalorder %s379_s21, %s379_s21 }
  0x17   :  { %308 = vmatpush3.bf16.xpose.msra.mxu0 %v305_v3  ;;  %345 = vmatpush3.bf16.xpose.msra.mxu1 %v305_v3  ;;  %v317_v12 = vpack.c.bf16 %v30_v11, %v29_v10  ;;  %v321_v14 = vpack.c.bf16 %v32_v13, %v31_v6  ;;  %v34_v16 = vld [vmem:[#allocation2 + $0x58] sm:$0xff]  ;;  %v35_v18 = vld [vmem:[#allocation2 + $0x60] sm:$0xff]  ;;  %v36_v19 = vld [vmem:[#allocation2 + $0x68] sm:$0xff] }
  0x18   :  { %310 = vmatprep.subr.bf16.mxu0 %v309_v5  ;;  %338 = vmatprep.subr.bf16.mxu1 %v309_v5  ;;  %v325_v17 = vpack.c.bf16 %v34_v16, %v33_v15  ;;  %v329_v20 = vpack.c.bf16 %v36_v19, %v35_v18  ;;  %v37_v21 = vld [vmem:[#allocation2 + $0x70] sm:$0xff]  ;;  %v38_v22 = vld [vmem:[#allocation2 + $0x78] sm:$0xff]  ;;  %p386_p11 = por %p385_p10, %p384_p9 }
  0x19   :  { %v333_v23 = vpack.c.bf16 %v38_v22, %v37_v21 }
  0x1a   :  { %p387_p12 = pnand %p386_p11, %p380_p8 }
  0x1f   :  { %312 = vmatpush3.bf16.xpose.msra.mxu0 %v309_v5  ;;  %346 = vmatpush3.bf16.xpose.msra.mxu1 %v309_v5 }
  0x20   :  { %314 = vmatprep.subr.bf16.mxu0 %v313_v9  ;;  %339 = vmatprep.subr.bf16.mxu1 %v313_v9 }
  0x27   :  { %316 = vmatpush3.bf16.xpose.msra.mxu0 %v313_v9  ;;  %347 = vmatpush3.bf16.xpose.msra.mxu1 %v313_v9 }
  0x28   :  { %318 = vmatprep.subr.bf16.mxu0 %v317_v12  ;;  %340 = vmatprep.subr.bf16.mxu1 %v317_v12 }
  0x2f   :  { %320 = vmatpush3.bf16.xpose.msra.mxu0 %v317_v12  ;;  %348 = vmatpush3.bf16.xpose.msra.mxu1 %v317_v12 }
  0x30   :  { %322 = vmatprep.subr.bf16.mxu0 %v321_v14  ;;  %341 = vmatprep.subr.bf16.mxu1 %v321_v14 }
  0x37   :  { %324 = vmatpush3.bf16.xpose.msra.mxu0 %v321_v14  ;;  %349 = vmatpush3.bf16.xpose.msra.mxu1 %v321_v14 }
  0x38   :  { %326 = vmatprep.subr.bf16.mxu0 %v325_v17  ;;  %342 = vmatprep.subr.bf16.mxu1 %v325_v17 }
  0x3f   :  { %328 = vmatpush3.bf16.xpose.msra.mxu0 %v325_v17  ;;  %350 = vmatpush3.bf16.xpose.msra.mxu1 %v325_v17 }
  0x40   :  { %330 = vmatprep.subr.bf16.mxu0 %v329_v20  ;;  %343 = vmatprep.subr.bf16.mxu1 %v329_v20 }
  0x47   :  { %332 = vmatpush3.bf16.xpose.msra.mxu0 %v329_v20  ;;  %351 = vmatpush3.bf16.xpose.msra.mxu1 %v329_v20 }
  0x48   :  { %334 = vmatprep.subr.bf16.mxu0 %v333_v23  ;;  %344 = vmatprep.subr.bf16.mxu1 %v333_v23 }
  0x4f   :  { %336 = vmatpush3.bf16.xpose.msra.mxu0 %v333_v23  ;;  %352 = vmatpush3.bf16.xpose.msra.mxu1 %v333_v23 }
  0x56   :  { %282 = vmatmul.mubr.f32.vlgmr.msra.gmra.mrb[0].mxu0 %v24_v1  ;;  %294 = vmatmul.mubr.f32.vlgmr.msra.gmra.mrb[0].mxu1 %v32_v13 }
  0x57   :  { %284 = vmatprep.mubr.f32.mxu0 %v25_v2  ;;  %296 = vmatprep.mubr.f32.mxu1 %v33_v15 }
  0x5a   :  { %285 = vmatmul.mubr.f32.gmra.mrb[2].mxu0 %v26_v4  ;;  %297 = vmatmul.mubr.f32.gmra.mrb[2].mxu1 %v34_v16 }
  0x5b   :  { %287 = vmatprep.mubr.f32.mxu0 %v27_v7  ;;  %299 = vmatprep.mubr.f32.mxu1 %v35_v18 }
  0x5e   :  { %288 = vmatmul.mubr.f32.gmra.mrb[4].mxu0 %v28_v8  ;;  %300 = vmatmul.mubr.f32.gmra.mrb[4].mxu1 %v36_v19 }
  0x5f   :  { %290 = vmatprep.mubr.f32.mxu0 %v29_v10  ;;  %302 = vmatprep.mubr.f32.mxu1 %v37_v21 }
  0x62   :  { %291 = vmatmul.mubr.f32.gmra.mrb[6].mxu0 %v30_v11  ;;  %303 = vmatmul.mubr.f32.gmra.mrb[6].mxu1 %v38_v22 }
 0x129   :  { %v283_v24 = vpop.f32.mrb[0].mxu0  ;;  %v295_v25 = vpop.f32.mrb[0].mxu1 }
 0x12a   :  { %185 = vst [vmem:[#allocation5 + $0x8] sm:$0xff] %v283_v24  ;;  %193 = vst [vmem:[#allocation5 + $0x48] sm:$0xff] %v295_v25  ;;  %v105_v26 = vpop.f32.mrb[1].mxu0  ;;  %v145_v27 = vpop.f32.mrb[1].mxu1 }
 0x12b   :  { %184 = vst [vmem:[#allocation5] sm:$0xff] %v105_v26  ;;  %192 = vst [vmem:[#allocation5 + $0x40] sm:$0xff] %v145_v27 }
 0x12d   :  { %v286_v28 = vpop.f32.mrb[2].mxu0  ;;  %v298_v29 = vpop.f32.mrb[2].mxu1 }
 0x12e   :  { %187 = vst [vmem:[#allocation5 + $0x18] sm:$0xff] %v286_v28  ;;  %195 = vst [vmem:[#allocation5 + $0x58] sm:$0xff] %v298_v29  ;;  %v115_v30 = vpop.f32.mrb[3].mxu0  ;;  %v155_v31 = vpop.f32.mrb[3].mxu1 }
 0x12f   :  { %186 = vst [vmem:[#allocation5 + $0x10] sm:$0xff] %v115_v30  ;;  %194 = vst [vmem:[#allocation5 + $0x50] sm:$0xff] %v155_v31 }
 0x131   :  { %v289_v32 = vpop.f32.mrb[4].mxu0  ;;  %v301_v33 = vpop.f32.mrb[4].mxu1 }
 0x132   :  { %189 = vst [vmem:[#allocation5 + $0x28] sm:$0xff] %v289_v32  ;;  %197 = vst [vmem:[#allocation5 + $0x68] sm:$0xff] %v301_v33  ;;  %v125_v34 = vpop.f32.mrb[5].mxu0  ;;  %v165_v35 = vpop.f32.mrb[5].mxu1 }
 0x133   :  { %188 = vst [vmem:[#allocation5 + $0x20] sm:$0xff] %v125_v34  ;;  %196 = vst [vmem:[#allocation5 + $0x60] sm:$0xff] %v165_v35 }
 0x135   :  { %v292_v36 = vpop.f32.mrb[6].mxu0  ;;  %v304_v37 = vpop.f32.mrb[6].mxu1 }
 0x136   :  { %191 = vst [vmem:[#allocation5 + $0x38] sm:$0xff] %v292_v36  ;;  %199 = vst [vmem:[#allocation5 + $0x78] sm:$0xff] %v304_v37  ;;  %v135_v38 = vpop.f32.mrb[7].mxu0  ;;  %v175_v39 = vpop.f32.mrb[7].mxu1 }
 0x137   :  { %190 = vst [vmem:[#allocation5 + $0x30] sm:$0xff] %v135_v38  ;;  %198 = vst [vmem:[#allocation5 + $0x70] sm:$0xff] %v175_v39 }
 0x138   :  { %390 = shalt.err (!%p387_p12)
}
 0x139   :  { %s391_s24 = scalar_lea.hbm %s450_s1, 2048 }
 0x13a   :  { %p392_p13 = scmp.ne.s32.totalorder %s450_s1, %s391_s24  ;;  %p395_p0 = scmp.lt.u32.totalorder %s391_s24, %s450_s1 }
 0x13c   :  { %p397_p1 = pnand %p395_p0, %p392_p13 }
 0x13e   :  { %400 = shalt.err (!%p397_p1)
}
 0x13f   :  { %211 = dma.vmem_to_hbm [thread:$0]  %s206_s20, 2048, %s450_s1, [#allocation4], %s406_s16, %s406_s16, %s407_s17  }
 0x140   :  { %403 = dma.done.wait [#allocation4], 2048  }
 0x141   :  { %404 = vsyncadd [#allocation4], 4294965248 }
 0x142   :  { %215 = vsyncpa [#allocation3], 1 }
 0x143   :  { %216 = vsyncpa [#allocation4], 1 }

</bundles_post_ra>
